<compile_context>
chip_gen: v7x
topology: tpu7x:2x2x1
jax: 0.10.0
libtpu: 0.0.40
codegen_flags: <defaults>
</compile_context>

<pallas_src>
import functools

import jax
import jax.numpy as jnp
from jax.experimental import pallas as pl
from jax.experimental.pallas import tpu as pltpu


def _round_up(x, m):
    return (x + m - 1) // m * m


def _largest_divisor_leq(n, cap):
    cap = max(1, min(n, cap))
    for d in range(cap, 0, -1):
        if n % d == 0:
            return d
    return 1


# ----------------------------------------------------------------------------
# Kernel 1: tiled matmul (im2col GEMM) with fused per-tile BN statistics.
#   A (M, K) bf16 @ B (K, OC) bf16 -> conv (M, OC) f32
#   plus per-row-tile column sums / sums-of-squares (for BatchNorm batch stats)
#   emitted from the accumulator at the final K step -- essentially free under
#   the MXU, and removes an extra full HBM pass over the conv slab.
# ----------------------------------------------------------------------------
def _matmul_stats_kernel(a_ref, b_ref, o_ref, sum_ref, sq_ref, acc_ref):
    k = pl.program_id(2)

    @pl.when(k == 0)
    def _():
        acc_ref[...] = jnp.zeros_like(acc_ref)

    acc_ref[...] += jnp.dot(a_ref[...], b_ref[...],
                            preferred_element_type=jnp.float32)

    @pl.when(k == pl.num_programs(2) - 1)
    def _():
        r = acc_ref[...]
        o_ref[...] = r
        sum_ref[...] = jnp.sum(r, axis=0, keepdims=True)[None]
        sq_ref[...] = jnp.sum(r * r, axis=0, keepdims=True)[None]


def _conv_matmul_with_stats(patches_bf16, wmat_bf16):
    M, K = patches_bf16.shape
    _, OC = wmat_bf16.shape

    # Row tile: big tiles amortize per-step overhead, but keep >=2 row
    # programs when possible so both v7x TensorCores get work.
    if M >= 1024:
        tm = 512
    else:
        tm = max(16, _round_up((M + 1) // 2, 16))
    Mp = _round_up(M, tm)

    # Column tile: no padding of small OC (full-dim block is legal);
    # 128-wide tiles when OC is a clean multiple of 128.
    if OC >= 128 and OC % 128 == 0:
        tn, nj = 128, OC // 128
    else:
        tn, nj = OC, 1

    # K: keep the whole reduction in one block when it fits comfortably in
    # VMEM (no k grid axis, weights stay resident); otherwise split.
    if K <= 4096:
        tk, Kp = K, K
    else:
        tk = 2048
        Kp = _round_up(K, tk)
    nk = Kp // tk

    a, b = patches_bf16, wmat_bf16
    if Mp != M:
        a = jnp.pad(a, ((0, Mp - M), (0, 0)))
    if Kp != K:
        a = jnp.pad(a, ((0, 0), (0, Kp - K)))
        b = jnp.pad(b, ((0, Kp - K), (0, 0)))

    ni = Mp // tm
    conv, sums, sqs = pl.pallas_call(
        _matmul_stats_kernel,
        out_shape=(jax.ShapeDtypeStruct((Mp, OC), jnp.float32),
                   jax.ShapeDtypeStruct((ni, 1, OC), jnp.float32),
                   jax.ShapeDtypeStruct((ni, 1, OC), jnp.float32)),
        grid_spec=pltpu.PrefetchScalarGridSpec(
            num_scalar_prefetch=0,
            grid=(ni, nj, nk),
            in_specs=[pl.BlockSpec((tm, tk), lambda i, j, k: (i, k)),
                      pl.BlockSpec((tk, tn), lambda i, j, k: (k, j))],
            out_specs=(pl.BlockSpec((tm, tn), lambda i, j, k: (i, j)),
                       pl.BlockSpec((1, 1, tn), lambda i, j, k: (i, 0, j)),
                       pl.BlockSpec((1, 1, tn), lambda i, j, k: (i, 0, j))),
            scratch_shapes=[pltpu.VMEM((tm, tn), jnp.float32)]),
        compiler_params=pltpu.CompilerParams(
            dimension_semantics=("parallel", "parallel", "arbitrary")),
    )(a, b)
    return conv, sums, sqs, Mp, tm, tn, nj


# ----------------------------------------------------------------------------
# Kernel 2a: fused BatchNorm affine + LeakyReLU (no max-pool). f32 epilogue.
# ----------------------------------------------------------------------------
def _bn_act_kernel(x_ref, s_ref, b_ref, o_ref, *, slope):
    y = x_ref[...] * s_ref[...] + b_ref[...]
    o_ref[...] = jnp.where(y >= 0, y, slope * y)


# ----------------------------------------------------------------------------
# Kernel 2b: fused BatchNorm affine + LeakyReLU + 2x2/2 max-pool.
#   Input block: (1, tph, 2, PW, 2*OC) -- a free (contiguous) reshape of the
#   NHWC conv output; the 2x2 window's H pair is a leading dim, its W pair is
#   packed into the lane dim. No extra HBM copy of the conv slab is made.
# ----------------------------------------------------------------------------
def _bn_act_pool_kernel(x_ref, s_ref, b_ref, o_ref, *, slope, oc):
    y = x_ref[...] * s_ref[...] + b_ref[...]
    y = jnp.where(y >= 0, y, slope * y)
    h = jnp.maximum(y[:, :, 0, :, :], y[:, :, 1, :, :])   # max over H window
    o_ref[...] = jnp.maximum(h[..., :oc], h[..., oc:])    # max over W window


# ----------------------------------------------------------------------------
# Forward pass
# ----------------------------------------------------------------------------
def conv_block_forward(x, w, gamma, beta, *, stride=1, padding=0, eps=1e-5,
                       max_pool=False, negative_slope=0.1):
    """x: (N, C, H, W) float32 (NCHW); w: (OC, C, KH, KW); gamma/beta: (OC,)."""
    N, C, H, W_in = x.shape
    OC, _, KH, KW = w.shape
    OH = (H + 2 * padding - KH) // stride + 1
    OW = (W_in + 2 * padding - KW) // stride + 1
    M = N * OH * OW
    K = C * KH * KW

    # ---- im2col in NHWC token x channel order (plain-JAX glue, bf16) ----
    x_nhwc = jnp.transpose(x, (0, 2, 3, 1)).astype(jnp.float32)
    xp = jnp.pad(x_nhwc, ((0, 0), (padding, padding), (padding, padding), (0, 0)))
    cols = []
    for kh in range(KH):
        for kw in range(KW):
            cols.append(xp[:, kh:kh + (OH - 1) * stride + 1:stride,
                              kw:kw + (OW - 1) * stride + 1:stride, :])
    patches = jnp.stack(cols, axis=3).reshape(M, K).astype(jnp.bfloat16)
    # TODO(synk): fold the KH*KW window offsets into the GEMM K grid axis
    # (implicit im2col via shifted index_maps / manual DMA) so the input is not
    # duplicated KH*KW-fold in HBM.
    wmat = jnp.transpose(w, (2, 3, 1, 0)).reshape(K, OC).astype(jnp.bfloat16)

    # ---- conv GEMM with fused per-tile BN statistics ----
    conv, sums, sqs, Mp, tm, tn, nj = _conv_matmul_with_stats(patches, wmat)

    # ---- BatchNorm2d batch statistics from the fused partial sums ----
    total = jnp.sum(sums, axis=(0, 1))
    total_sq = jnp.sum(sqs, axis=(0, 1))
    mean = total / M
    var = jnp.maximum(total_sq / M - mean * mean, 0.0)   # biased var, clamp cancel
    scale = gamma.astype(jnp.float32) * jax.lax.rsqrt(var + eps)
    shift = beta.astype(jnp.float32) - mean * scale
    # TODO(synk): running_mean / running_var buffer updates (training-time side
    # effect, not part of the forward output) are not reproduced.

    if not max_pool:
        y_pad = pl.pallas_call(
            functools.partial(_bn_act_kernel, slope=negative_slope),
            out_shape=jax.ShapeDtypeStruct((Mp, OC), jnp.float32),
            grid_spec=pltpu.PrefetchScalarGridSpec(
                num_scalar_prefetch=0,
                grid=(Mp // tm, nj),
                in_specs=[pl.BlockSpec((tm, tn), lambda i, j: (i, j)),
                          pl.BlockSpec((1, tn), lambda i, j: (0, j)),
                          pl.BlockSpec((1, tn), lambda i, j: (0, j))],
                out_specs=pl.BlockSpec((tm, tn), lambda i, j: (i, j))),
            compiler_params=pltpu.CompilerParams(
                dimension_semantics=("parallel", "parallel")),
        )(conv, scale.reshape(1, OC), shift.reshape(1, OC))
        return y_pad[:M].reshape(N, OH, OW, OC).transpose(0, 3, 1, 2)

    # ---- fused BN + LeakyReLU + 2x2 max-pool (no 'win' materialization) ----
    PH, PW = OH // 2, OW // 2
    conv_nhwc = conv[:M].reshape(N, OH, OW, OC)
    if OH != 2 * PH or OW != 2 * PW:          # PyTorch MaxPool2d floors
        conv_nhwc = conv_nhwc[:, :2 * PH, :2 * PW, :]
    xin = conv_nhwc.reshape(N, PH, 2, PW, 2 * OC)          # free reshape
    scale2 = jnp.concatenate([scale, scale]).reshape(1, 2 * OC)
    shift2 = jnp.concatenate([shift, shift]).reshape(1, 2 * OC)

    # Tile the pooled-row axis so the block stays a few MiB (v7x VMEM-safe).
    block_row_bytes = 2 * PW * 2 * OC * 4
    tph = _largest_divisor_leq(PH, max(1, (1 << 21) // block_row_bytes))

    out = pl.pallas_call(
        functools.partial(_bn_act_pool_kernel, slope=negative_slope, oc=OC),
        out_shape=jax.ShapeDtypeStruct((N, PH, PW, OC), jnp.float32),
        grid_spec=pltpu.PrefetchScalarGridSpec(
            num_scalar_prefetch=0,
            grid=(N, PH // tph),
            in_specs=[pl.BlockSpec((1, tph, 2, PW, 2 * OC),
                                   lambda n, p: (n, p, 0, 0, 0)),
                      pl.BlockSpec((1, 2 * OC), lambda n, p: (0, 0)),
                      pl.BlockSpec((1, 2 * OC), lambda n, p: (0, 0))],
            out_specs=pl.BlockSpec((1, tph, PW, OC),
                                   lambda n, p: (n, p, 0, 0))),
        compiler_params=pltpu.CompilerParams(
            dimension_semantics=("parallel", "parallel")),
    )(xin, scale2, shift2)

    return out.transpose(0, 3, 1, 2)


# ----------------------------------------------------------------------------
# Demo / self-check
# ----------------------------------------------------------------------------
if __name__ == "__main__":
    key = jax.random.PRNGKey(0)
    kx, kw, kg, kb = jax.random.split(key, 4)

    # Small shapes consistent with a YOLOv1 ConvBlock.
    N, C, H, Wd = 2, 4, 16, 16
    OC, KS, stride, padding = 8, 3, 1, 1

    x = jax.random.normal(kx, (N, C, H, Wd), dtype=jnp.float32)
    # Conv2d default init: U(-1/sqrt(fan_in), +1/sqrt(fan_in)); bias=False.
    bound = 1.0 / (C * KS * KS) ** 0.5
    w = jax.random.uniform(kw, (OC, C, KS, KS), jnp.float32, -bound, bound)
    gamma = jax.random.uniform(kg, (OC,), jnp.float32, 0.5, 1.5)
    beta = 0.1 * jax.random.normal(kb, (OC,), dtype=jnp.float32)

    def reference(x, w, gamma, beta, max_pool):
        conv = jax.lax.conv_general_dilated(
            x, w, window_strides=(stride, stride),
            padding=[(padding, padding), (padding, padding)],
            dimension_numbers=("NCHW", "OIHW", "NCHW"))
        mean = conv.mean(axis=(0, 2, 3), keepdims=True)
        var = conv.var(axis=(0, 2, 3), keepdims=True)
        y = (conv - mean) / jnp.sqrt(var + 1e-5)
        y = y * gamma.reshape(1, -1, 1, 1) + beta.reshape(1, -1, 1, 1)
        y = jnp.where(y >= 0, y, 0.1 * y)
        if max_pool:
            y = jax.lax.reduce_window(y, -jnp.inf, jax.lax.max,
                                      (1, 1, 2, 2), (1, 1, 2, 2), "VALID")
        return y

    for max_pool in (True, False):
        fwd = jax.jit(functools.partial(conv_block_forward, stride=stride,
                                        padding=padding, max_pool=max_pool))
        out = jax.block_until_ready(fwd(x, w, gamma, beta))
        ref = reference(x, w, gamma, beta, max_pool)
        assert out.shape == ref.shape, (out.shape, ref.shape)
        max_err = float(jnp.max(jnp.abs(out - ref)))
        # Loose tolerance: bf16 MXU operands vs the pure-f32 XLA reference.
        assert jnp.allclose(out, ref, atol=3e-2, rtol=3e-2), f"max_err={max_err}"

    print("KERNEL_OK")
</pallas_src>

<mosaic_0001>
module attributes {stable_mosaic.version = 11 : i64} {
  func.func @_matmul_stats_kernel(%arg0: i32, %arg1: i32, %arg2: i32, %arg3: memref<256x36xbf16, #tpu.memory_space<vmem>>, %arg4: memref<36x8xbf16, #tpu.memory_space<vmem>>, %arg5: memref<256x8xf32, #tpu.memory_space<vmem>>, %arg6: memref<1x1x8xf32, #tpu.memory_space<vmem>>, %arg7: memref<1x1x8xf32, #tpu.memory_space<vmem>>, %arg8: memref<256x8xf32, #tpu.memory_space<vmem>>) attributes {dimension_semantics = [#tpu.dimension_semantics<parallel>, #tpu.dimension_semantics<parallel>, #tpu.dimension_semantics<arbitrary>], iteration_bounds = array<i64: 2, 1, 1>, scalar_prefetch = 0 : i64, scratch_operands = 1 : i64, tpu.core_type = #tpu.core_type<tc>, window_params = [{transform_indices = @transform_0, window_bounds = array<i64: 256, 36>}, {transform_indices = @transform_1, window_bounds = array<i64: 36, 8>}, {transform_indices = @transform_2, window_bounds = array<i64: 256, 8>}, {transform_indices = @transform_3, window_bounds = array<i64: 1, 1, 8>}, {transform_indices = @transform_4, window_bounds = array<i64: 1, 1, 8>}]} {
    %c0_i32 = arith.constant 0 : i32
    %0 = arith.cmpi eq, %arg2, %c0_i32 : i32
    %1 = arith.extui %0 : i1 to i32
    %c0_i32_0 = arith.constant 0 : i32
    %2 = arith.cmpi ne, %1, %c0_i32_0 : i32
    scf.if %2 {
      %cst_10 = arith.constant 0.000000e+00 : f32
      %12 = vector.broadcast %cst_10 : f32 to vector<256x8xf32>
      %c0_11 = arith.constant 0 : index
      %c0_12 = arith.constant 0 : index
      %13 = vector.load %arg8[%c0_11, %c0_12] : memref<256x8xf32, #tpu.memory_space<vmem>>, vector<256x8xf32>
      tpu.vector_store %arg8[%c0_11, %c0_12], %12 {strides = array<i32>} : memref<256x8xf32, #tpu.memory_space<vmem>>, vector<256x8xf32>,
    } else {
    }
    %c0 = arith.constant 0 : index
    %c0_1 = arith.constant 0 : index
    %3 = vector.load %arg8[%c0, %c0_1] : memref<256x8xf32, #tpu.memory_space<vmem>>, vector<256x8xf32>
    %c0_2 = arith.constant 0 : index
    %c0_3 = arith.constant 0 : index
    %4 = vector.load %arg3[%c0_2, %c0_3] : memref<256x36xbf16, #tpu.memory_space<vmem>>, vector<256x36xbf16>
    %c0_4 = arith.constant 0 : index
    %c0_5 = arith.constant 0 : index
    %5 = vector.load %arg4[%c0_4, %c0_5] : memref<36x8xbf16, #tpu.memory_space<vmem>>, vector<36x8xbf16>
    %cst = arith.constant dense<0.000000e+00> : vector<256x8xf32>
    %6 = tpu.matmul %4, %5, %cst {dimension_numbers = #tpu.dot_dimension_numbers<[1], [0], [0], [1], [0, 0, 1, 1], [], []>} : vector<256x36xbf16>, vector<36x8xbf16>, vector<256x8xf32> -> vector<256x8xf32>
    %7 = arith.addf %3, %6 : vector<256x8xf32>
    %c0_6 = arith.constant 0 : index
    %c0_7 = arith.constant 0 : index
    %8 = vector.load %arg8[%c0_6, %c0_7] : memref<256x8xf32, #tpu.memory_space<vmem>>, vector<256x8xf32>
    tpu.vector_store %arg8[%c0_6, %c0_7], %7 {strides = array<i32>} : memref<256x8xf32, #tpu.memory_space<vmem>>, vector<256x8xf32>,
    %c0_i32_8 = arith.constant 0 : i32
    %9 = arith.cmpi eq, %arg2, %c0_i32_8 : i32
    %10 = arith.extui %9 : i1 to i32
    %c0_i32_9 = arith.constant 0 : i32
    %11 = arith.cmpi ne, %10, %c0_i32_9 : i32
    scf.if %11 {
      %c0_10 = arith.constant 0 : index
      %c0_11 = arith.constant 0 : index
      %12 = vector.load %arg8[%c0_10, %c0_11] : memref<256x8xf32, #tpu.memory_space<vmem>>, vector<256x8xf32>
      %c0_12 = arith.constant 0 : index
      %c0_13 = arith.constant 0 : index
      %13 = vector.load %arg5[%c0_12, %c0_13] : memref<256x8xf32, #tpu.memory_space<vmem>>, vector<256x8xf32>
      tpu.vector_store %arg5[%c0_12, %c0_13], %12 {strides = array<i32>} : memref<256x8xf32, #tpu.memory_space<vmem>>, vector<256x8xf32>,
      %cst_14 = arith.constant dense<0.000000e+00> : vector<8xf32>
      %14 = vector.multi_reduction <add>, %12, %cst_14 [0] : vector<256x8xf32> to vector<8xf32>
      %15 = vector.shape_cast %14 : vector<8xf32> to vector<1x8xf32>
      %16 = vector.shape_cast %15 : vector<1x8xf32> to vector<1x1x8xf32>
      %c0_15 = arith.constant 0 : index
      %c0_16 = arith.constant 0 : index
      %c0_17 = arith.constant 0 : index
      %17 = vector.load %arg6[%c0_15, %c0_16, %c0_17] : memref<1x1x8xf32, #tpu.memory_space<vmem>>, vector<1x1x8xf32>
      tpu.vector_store %arg6[%c0_15, %c0_16, %c0_17], %16 {strides = array<i32>} : memref<1x1x8xf32, #tpu.memory_space<vmem>>, vector<1x1x8xf32>,
      %18 = arith.mulf %12, %12 : vector<256x8xf32>
      %cst_18 = arith.constant dense<0.000000e+00> : vector<8xf32>
      %19 = vector.multi_reduction <add>, %18, %cst_18 [0] : vector<256x8xf32> to vector<8xf32>
      %20 = vector.shape_cast %19 : vector<8xf32> to vector<1x8xf32>
      %21 = vector.shape_cast %20 : vector<1x8xf32> to vector<1x1x8xf32>
      %c0_19 = arith.constant 0 : index
      %c0_20 = arith.constant 0 : index
      %c0_21 = arith.constant 0 : index
      %22 = vector.load %arg7[%c0_19, %c0_20, %c0_21] : memref<1x1x8xf32, #tpu.memory_space<vmem>>, vector<1x1x8xf32>
      tpu.vector_store %arg7[%c0_19, %c0_20, %c0_21], %21 {strides = array<i32>} : memref<1x1x8xf32, #tpu.memory_space<vmem>>, vector<1x1x8xf32>,
    } else {
    }
    return
  }
  func.func @transform_0(%arg0: i32, %arg1: i32, %arg2: i32) -> (i32, i32) {
    %c0_i32 = arith.constant 0 : i32
    return %arg0, %arg2 : i32, i32
  }
  func.func @transform_1(%arg0: i32, %arg1: i32, %arg2: i32) -> (i32, i32) {
    %c0_i32 = arith.constant 0 : i32
    return %arg2, %arg1 : i32, i32
  }
  func.func @transform_2(%arg0: i32, %arg1: i32, %arg2: i32) -> (i32, i32) {
    %c0_i32 = arith.constant 0 : i32
    return %arg0, %arg1 : i32, i32
  }
  func.func @transform_3(%arg0: i32, %arg1: i32, %arg2: i32) -> (i32, i32, i32) {
    %c0_i32 = arith.constant 0 : i32
    %c0_i32_0 = arith.constant 0 : i32
    return %arg0, %c0_i32, %arg1 : i32, i32, i32
  }
  func.func @transform_4(%arg0: i32, %arg1: i32, %arg2: i32) -> (i32, i32, i32) {
    %c0_i32 = arith.constant 0 : i32
    %c0_i32_0 = arith.constant 0 : i32
    return %arg0, %c0_i32, %arg1 : i32, i32, i32
  }
}

module attributes {stable_mosaic.version = 11 : i64} {
  func.func @_bn_act_pool_kernel(%arg0: i32, %arg1: i32, %arg2: memref<1x8x2x8x16xf32, #tpu.memory_space<vmem>>, %arg3: memref<1x16xf32, #tpu.memory_space<vmem>>, %arg4: memref<1x16xf32, #tpu.memory_space<vmem>>, %arg5: memref<1x8x8x8xf32, #tpu.memory_space<vmem>>) attributes {dimension_semantics = [#tpu.dimension_semantics<parallel>, #tpu.dimension_semantics<parallel>], iteration_bounds = array<i64: 2, 1>, scalar_prefetch = 0 : i64, scratch_operands = 0 : i64, tpu.core_type = #tpu.core_type<tc>, window_params = [{transform_indices = @transform_0, window_bounds = array<i64: 1, 8, 2, 8, 16>}, {pipeline_mode = #tpu.pipeline_mode<synchronous>, transform_indices = @transform_1, window_bounds = array<i64: 1, 16>}, {pipeline_mode = #tpu.pipeline_mode<synchronous>, transform_indices = @transform_2, window_bounds = array<i64: 1, 16>}, {transform_indices = @transform_3, window_bounds = array<i64: 1, 8, 8, 8>}]} {
    %c0 = arith.constant 0 : index
    %c0_0 = arith.constant 0 : index
    %c0_1 = arith.constant 0 : index
    %c0_2 = arith.constant 0 : index
    %c0_3 = arith.constant 0 : index
    %0 = vector.load %arg2[%c0, %c0_0, %c0_1, %c0_2, %c0_3] : memref<1x8x2x8x16xf32, #tpu.memory_space<vmem>>, vector<1x8x2x8x16xf32>
    %c0_4 = arith.constant 0 : index
    %c0_5 = arith.constant 0 : index
    %1 = vector.load %arg3[%c0_4, %c0_5] : memref<1x16xf32, #tpu.memory_space<vmem>>, vector<1x16xf32>
    %2 = vector.shape_cast %1 : vector<1x16xf32> to vector<1x1x1x1x16xf32>
    %3 = vector.broadcast %2 : vector<1x1x1x1x16xf32> to vector<1x8x2x8x16xf32>
    %4 = arith.mulf %0, %3 : vector<1x8x2x8x16xf32>
    %c0_6 = arith.constant 0 : index
    %c0_7 = arith.constant 0 : index
    %5 = vector.load %arg4[%c0_6, %c0_7] : memref<1x16xf32, #tpu.memory_space<vmem>>, vector<1x16xf32>
    %6 = vector.shape_cast %5 : vector<1x16xf32> to vector<1x1x1x1x16xf32>
    %7 = vector.broadcast %6 : vector<1x1x1x1x16xf32> to vector<1x8x2x8x16xf32>
    %8 = arith.addf %4, %7 : vector<1x8x2x8x16xf32>
    %cst = arith.constant 0.000000e+00 : f32
    %9 = vector.broadcast %cst : f32 to vector<1x8x2x8x16xf32>
    %10 = arith.cmpf oge, %8, %9 : vector<1x8x2x8x16xf32>
    %cst_8 = arith.constant 1.000000e-01 : f32
    %11 = vector.broadcast %cst_8 : f32 to vector<1x8x2x8x16xf32>
    %12 = arith.mulf %11, %8 : vector<1x8x2x8x16xf32>
    %13 = arith.select %10, %8, %12 : vector<1x8x2x8x16xi1>, vector<1x8x2x8x16xf32>
    %14 = vector.extract_strided_slice %13 {offsets = [0, 0, 0, 0, 0], sizes = [1, 8, 1, 8, 16], strides = [1, 1, 1, 1, 1]} : vector<1x8x2x8x16xf32> to vector<1x8x1x8x16xf32>
    %15 = vector.shape_cast %14 : vector<1x8x1x8x16xf32> to vector<1x8x8x16xf32>
    %16 = vector.extract_strided_slice %13 {offsets = [0, 0, 1, 0, 0], sizes = [1, 8, 1, 8, 16], strides = [1, 1, 1, 1, 1]} : vector<1x8x2x8x16xf32> to vector<1x8x1x8x16xf32>
    %17 = vector.shape_cast %16 : vector<1x8x1x8x16xf32> to vector<1x8x8x16xf32>
    %18 = arith.maximumf %15, %17 : vector<1x8x8x16xf32>
    %19 = vector.extract_strided_slice %18 {offsets = [0, 0, 0, 0], sizes = [1, 8, 8, 8], strides = [1, 1, 1, 1]} : vector<1x8x8x16xf32> to vector<1x8x8x8xf32>
    %20 = vector.extract_strided_slice %18 {offsets = [0, 0, 0, 8], sizes = [1, 8, 8, 8], strides = [1, 1, 1, 1]} : vector<1x8x8x16xf32> to vector<1x8x8x8xf32>
    %21 = arith.maximumf %19, %20 : vector<1x8x8x8xf32>
    %c0_9 = arith.constant 0 : index
    %c0_10 = arith.constant 0 : index
    %c0_11 = arith.constant 0 : index
    %c0_12 = arith.constant 0 : index
    %22 = vector.load %arg5[%c0_9, %c0_10, %c0_11, %c0_12] : memref<1x8x8x8xf32, #tpu.memory_space<vmem>>, vector<1x8x8x8xf32>
    tpu.vector_store %arg5[%c0_9, %c0_10, %c0_11, %c0_12], %21 {strides = array<i32>} : memref<1x8x8x8xf32, #tpu.memory_space<vmem>>, vector<1x8x8x8xf32>,
    return
  }
  func.func @transform_0(%arg0: i32, %arg1: i32) -> (i32, i32, i32, i32, i32) {
    %c0_i32 = arith.constant 0 : i32
    %c0_i32_0 = arith.constant 0 : i32
    %c0_i32_1 = arith.constant 0 : i32
    %c0_i32_2 = arith.constant 0 : i32
    return %arg0, %arg1, %c0_i32, %c0_i32_0, %c0_i32_1 : i32, i32, i32, i32, i32
  }
  func.func @transform_1(%arg0: i32, %arg1: i32) -> (i32, i32) {
    %c0_i32 = arith.constant 0 : i32
    %c0_i32_0 = arith.constant 0 : i32
    %c0_i32_1 = arith.constant 0 : i32
    return %c0_i32, %c0_i32_0 : i32, i32
  }
  func.func @transform_2(%arg0: i32, %arg1: i32) -> (i32, i32) {
    %c0_i32 = arith.constant 0 : i32
    %c0_i32_0 = arith.constant 0 : i32
    %c0_i32_1 = arith.constant 0 : i32
    return %c0_i32, %c0_i32_0 : i32, i32
  }
  func.func @transform_3(%arg0: i32, %arg1: i32) -> (i32, i32, i32, i32) {
    %c0_i32 = arith.constant 0 : i32
    %c0_i32_0 = arith.constant 0 : i32
    %c0_i32_1 = arith.constant 0 : i32
    return %arg0, %arg1, %c0_i32, %c0_i32_0 : i32, i32, i32, i32
  }
}

</mosaic_0001>

<bundles_post_ra>
// kernel: conv_block_forward.3
= control target key start
LH: loop header
LB: loop body
LE: loop exit
PB: predicated region body
PF: predicated region fallthrough
CT: control target
= control target key end

     0   :  { %s555_s12 = smov 0   ;;  %s557_s13 = smov 0   ;;  %s681_s0 = inlined_call_operand.vmem [shape: f32[2,8,2,8,16], index: 0, kind: input, shape index: {}]   ;;  %s682_s1 = inlined_call_operand.vmem [shape: f32[1,16], index: 1, kind: input, shape index: {}]   ;;  %s683_s2 = inlined_call_operand.vmem [shape: f32[1,16], index: 2, kind: input, shape index: {}]   ;;  %s684_s3 = inlined_call_operand.vmem [shape: f32[2,8,8,8], index: 3, kind: output, shape index: {}]  }
   0x1   :  { %s559_s14 = smov 0  }
   0x2 LB: > { %s25_s15 = sadd.s32 1, %s528_s13  ;;  %p474_p0 = scmp.ge.s32.totalorder %s532_s14, 1  ;;  %s532_s14 = sphi %s559_s14, %s13_s14   ;;  %s528_s13 = sphi %s557_s13, %s686_s13   ;;  %s524_s12 = sphi %s555_s12, %s685_s12  }
   0x3   : > { %p27_p1 = scmp.ge.s32.totalorder %s25_s15, 2  ;;  %p159_p2 = scmp.lt.s32.totalorder %s532_s14, 3 }
   0x5   : > { %s688_s15 = smov (%p27_p1, %s25_s15), 0  ;;  %p160_p3 = pnand %p474_p0, %p159_p2 }
   0x6   : > { %p193_p4 = scmp.lt.s32.totalorder (!%p160_p3), %s524_s12, 1  ;;  %v579_v0 = vld [vmem:[%s682_s1] ss:$0 sm:$0xff] (!%p160_p3)  ;;  %s534_s24 = smov (!%p160_p3), 120  }
   0x7   : > { %163 = sbr.rel (%p160_p3) target bundleno = 163 (0xa3), region = 32  ;;  %v589_v1 = vld [vmem:[%s683_s2] ss:$0 sm:$0xff] (!%p160_p3) }
   0xe   : > { %s690_s12 = smov (!%p193_p4, %s524_s12), 1 }
   0xf   : > { %s483_s16 = sshll.u32 %s690_s12, 7  ;;  %s484_s25 = sshll.u32 %s690_s12, 6 }
  0x10   : > { %s584_s21 = scalar_lea.vmem %s681_s0, %s483_s16  ;;  %s211_s28 = scalar_lea.vmem %s684_s3, %s484_s25 }
  0x11   : > { %v217_v2 = vld [vmem:[%s584_s21 + $0x20] sm:$0xff]  ;;  %v218_v3 = vld [vmem:[%s584_s21 + $0x28] sm:$0xff]  ;;  %v219_v9 = vld [vmem:[%s584_s21 + $0x30] sm:$0xff] }
  0x12   : > { %v213_v4 = vld [vmem:[%s584_s21] sm:$0xff]  ;;  %v240_v5 = vmul.f32 %v579_v0, %v217_v2  ;;  %v241_v6 = vmul.f32 %v579_v0, %v218_v3  ;;  %v214_v7 = vld [vmem:[%s584_s21 + $0x8] sm:$0xff]  ;;  %v220_v10 = vld [vmem:[%s584_s21 + $0x38] sm:$0xff]  ;;  %v242_v12 = vmul.f32 %v579_v0, %v219_v9 }
  0x13   : > { %v236_v8 = vmul.f32 %v579_v0, %v213_v4  ;;  %v237_v11 = vmul.f32 %v579_v0, %v214_v7  ;;  %v243_v13 = vmul.f32 %v579_v0, %v220_v10  ;;  %v215_v14 = vld [vmem:[%s584_s21 + $0x10] sm:$0xff]  ;;  %v216_v15 = vld [vmem:[%s584_s21 + $0x18] sm:$0xff]  ;;  %v221_v32 = vld [vmem:[%s584_s21 + $0x40] sm:$0xff] }
  0x14   : > { %v263_v16 = vadd.f32 %v589_v1, %v240_v5  ;;  %v264_v17 = vadd.f32 %v589_v1, %v241_v6  ;;  %v238_v19 = vmul.f32 %v579_v0, %v215_v14  ;;  %v265_v21 = vadd.f32 %v589_v1, %v242_v12  ;;  %v223_v30 = vld [vmem:[%s584_s21 + $0x50] sm:$0xff]  ;;  %v224_v31 = vld [vmem:[%s584_s21 + $0x58] sm:$0xff]  ;;  %v222_v44 = vld [vmem:[%s584_s21 + $0x48] sm:$0xff] }
  0x15   : > { %v259_v18 = vadd.f32 %v589_v1, %v236_v8  ;;  %v260_v20 = vadd.f32 %v589_v1, %v237_v11  ;;  %v266_v22 = vadd.f32 %v589_v1, %v243_v13  ;;  %v239_v23 = vmul.f32 %v579_v0, %v216_v15  ;;  %v227_v46 = vld [vmem:[%s584_s21 + $0x70] sm:$0xff]  ;;  %v228_v56 = vld [vmem:[%s584_s21 + $0x78] sm:$0xff]  ;;  %v225_v60 = vld [vmem:[%s584_s21 + $0x60] sm:$0xff] }
  0x16   : > { %vm279_vm0 = vcmp.ge.f32.partialorder %v263_v16, 0.0  ;;  %vm280_vm1 = vcmp.ge.f32.partialorder %v264_v17, 0.0  ;;  %v295_v24 = vmul.f32 0.1, %v263_v16  ;;  %v296_v25 = vmul.f32 0.1, %v264_v17 }
  0x17   : > { %vm275_vm2 = vcmp.ge.f32.partialorder %v259_v18, 0.0  ;;  %vm276_vm3 = vcmp.ge.f32.partialorder %v260_v20, 0.0  ;;  %v291_v26 = vmul.f32 0.1, %v259_v18  ;;  %v292_v27 = vmul.f32 0.1, %v260_v20 }
  0x18   : > { %v311_v28 = vsel %vm279_vm0, %v263_v16, %v295_v24  ;;  %v312_v29 = vsel %vm280_vm1, %v264_v17, %v296_v25  ;;  %vm281_vm4 = vcmp.ge.f32.partialorder %v265_v21, 0.0  ;;  %vm282_vm5 = vcmp.ge.f32.partialorder %v266_v22, 0.0  ;;  %v226_v6 = vld [vmem:[%s584_s21 + $0x68] sm:$0xff] }
  0x19   : > { %v616_v33 = vmax.f32 %v311_v28, %v312_v29  ;;  %v307_v34 = vsel %vm275_vm2, %v259_v18, %v291_v26  ;;  %v308_v35 = vsel %vm276_vm3, %v260_v20, %v292_v27  ;;  %v297_v36 = vmul.f32 0.1, %v265_v21 }
  0x1a   : > { %v618_v37 = vmax.f32 %v307_v34, %v308_v35  ;;  %v298_v38 = vmul.f32 0.1, %v266_v22  ;;  %v261_v39 = vadd.f32 %v589_v1, %v238_v19  ;;  %v262_v40 = vadd.f32 %v589_v1, %v239_v23 }
  0x1b   : > { %343 = vrot.lane.b32.xlu1 %v616_v33, %s534_s24  ;;  %v313_v41 = vsel %vm281_vm4, %v265_v21, %v297_v36  ;;  %v246_v42 = vmul.f32 %v579_v0, %v223_v30  ;;  %v247_v43 = vmul.f32 %v579_v0, %v224_v31  ;;  %v244_v45 = vmul.f32 %v579_v0, %v221_v32 }
  0x1c   : > { %339 = vrot.lane.b32.xlu0 %v618_v37, %s534_s24  ;;  %v314_v47 = vsel %vm282_vm5, %v266_v22, %v298_v38  ;;  %vm277_vm6 = vcmp.ge.f32.partialorder %v261_v39, 0.0  ;;  %vm278_vm7 = vcmp.ge.f32.partialorder %v262_v40, 0.0  ;;  %v293_v48 = vmul.f32 0.1, %v261_v39 }
  0x1d   : > { %v632_v49 = vmax.f32 %v313_v41, %v314_v47  ;;  %v294_v50 = vmul.f32 0.1, %v262_v40  ;;  %v269_v51 = vadd.f32 %v589_v1, %v246_v42  ;;  %v270_v52 = vadd.f32 %v589_v1, %v247_v43 }
  0x1e   : > { %v309_v53 = vsel %vm277_vm6, %v261_v39, %v293_v48  ;;  %v245_v54 = vmul.f32 %v579_v0, %v222_v44  ;;  %v267_v55 = vadd.f32 %v589_v1, %v244_v45  ;;  %v250_v57 = vmul.f32 %v579_v0, %v227_v46 }
  0x1f   : > { %345 = vrot.lane.b32.xlu1 %v632_v49, %s534_s24  ;;  %v310_v58 = vsel %vm278_vm7, %v262_v40, %v294_v50  ;;  %vm285_vm8 = vcmp.ge.f32.partialorder %v269_v51, 0.0  ;;  %vm286_vm9 = vcmp.ge.f32.partialorder %v270_v52, 0.0  ;;  %v301_v59 = vmul.f32 0.1, %v269_v51 }
  0x20   : > { %v324_v61 = vmax.f32 %v309_v53, %v310_v58  ;;  %v302_v62 = vmul.f32 0.1, %v270_v52  ;;  %v268_v63 = vadd.f32 %v589_v1, %v245_v54  ;;  %vm283_vm10 = vcmp.ge.f32.partialorder %v267_v55, 0.0 }
  0x21   : > { %v317_v2 = vsel %vm285_vm8, %v269_v51, %v301_v59  ;;  %v299_v3 = vmul.f32 0.1, %v267_v55  ;;  %v251_v4 = vmul.f32 %v579_v0, %v228_v56  ;;  %v273_v5 = vadd.f32 %v589_v1, %v250_v57 }
  0x22   : > { %341 = vrot.lane.b32.xlu0 %v324_v61, %s534_s24  ;;  %v318_v7 = vsel %vm286_vm9, %v270_v52, %v302_v62  ;;  %vm284_vm11 = vcmp.ge.f32.partialorder %v268_v63, 0.0  ;;  %v300_v8 = vmul.f32 0.1, %v268_v63  ;;  %v248_v9 = vmul.f32 %v579_v0, %v225_v60 }
  0x23   : > { %v328_v10 = vmax.f32 %v317_v2, %v318_v7  ;;  %v315_v11 = vsel %vm283_vm10, %v267_v55, %v299_v3  ;;  %v274_v12 = vadd.f32 %v589_v1, %v251_v4  ;;  %vm289_vm12 = vcmp.ge.f32.partialorder %v273_v5, 0.0 }
  0x24   : > { %v316_v13 = vsel %vm284_vm11, %v268_v63, %v300_v8  ;;  %v305_v14 = vmul.f32 0.1, %v273_v5  ;;  %v249_v15 = vmul.f32 %v579_v0, %v226_v6  ;;  %v271_v16 = vadd.f32 %v589_v1, %v248_v9 }
  0x25   : > { %349 = vrot.lane.b32.xlu1 %v328_v10, %s534_s24  ;;  %v327_v17 = vmax.f32 %v315_v11, %v316_v13  ;;  %vm290_vm13 = vcmp.ge.f32.partialorder %v274_v12, 0.0  ;;  %v306_v18 = vmul.f32 0.1, %v274_v12  ;;  %vm371_vm0 = vcmask 64512  }
  0x26   : > { %v321_v19 = vsel %vm289_vm12, %v273_v5, %v305_v14  ;;  %v272_v20 = vadd.f32 %v589_v1, %v249_v15  ;;  %vm287_vm14 = vcmp.ge.f32.partialorder %v271_v16, 0.0  ;;  %v303_v21 = vmul.f32 0.1, %v271_v16 }
  0x27   : > { %347 = vrot.lane.b32.xlu0 %v327_v17, %s534_s24  ;;  %v322_v22 = vsel %vm290_vm13, %v274_v12, %v306_v18 }
  0x28   : > { %v330_v23 = vmax.f32 %v321_v19, %v322_v22  ;;  %vm288_vm15 = vcmp.ge.f32.partialorder %v272_v20, 0.0  ;;  %v304_v24 = vmul.f32 0.1, %v272_v20  ;;  %v319_v0 = vsel %vm287_vm14, %v271_v16, %v303_v21 }
  0x2a   : > { %353 = vrot.lane.b32.xlu1 %v330_v23, %s534_s24  ;;  %v320_v25 = vsel %vm288_vm15, %v272_v20, %v304_v24 }
  0x2b   : > { %v329_v26 = vmax.f32 %v319_v0, %v320_v25 }
  0x2d   : > { %351 = vrot.lane.b32.xlu0 %v329_v26, %s534_s24 }
  0x8d   : > { %v344_v1 = vpop.permute.xlu1 %343 }
  0x8e   : > { %v365_v27 = vmax.f32 %v616_v33, %v344_v1  ;;  %v340_v28 = vpop.permute.xlu0 %339 }
  0x8f   : > { %v363_v29 = vmax.f32 %v618_v37, %v340_v28 }
  0x90   : > { %374 = vst.msk [vmem:[%s211_s28 + $0x10] sm:$0xff] %vm371_vm0, %v365_v27 }
  0x91   : > { %372 = vst.msk [vmem:[%s211_s28] sm:$0xff] %vm371_vm0, %v363_v29  ;;  %v346_v30 = vpop.permute.xlu1 %345 }
  0x92   : > { %v366_v31 = vmax.f32 %v632_v49, %v346_v30 }
  0x94   : > { %375 = vst.msk [vmem:[%s211_s28 + $0x18] sm:$0xff] %vm371_vm0, %v366_v31  ;;  %v342_v32 = vpop.permute.xlu0 %341 }
  0x95   : > { %v364_v34 = vmax.f32 %v324_v61, %v342_v32 }
  0x97   : > { %373 = vst.msk [vmem:[%s211_s28 + $0x8] sm:$0xff] %vm371_vm0, %v364_v34  ;;  %v350_v35 = vpop.permute.xlu1 %349 }
  0x98   : > { %v368_v36 = vmax.f32 %v328_v10, %v350_v35 }
  0x99   : > { %v348_v38 = vpop.permute.xlu0 %347 }
  0x9a   : > { %377 = vst.msk [vmem:[%s211_s28 + $0x28] sm:$0xff] %vm371_vm0, %v368_v36  ;;  %v367_v33 = vmax.f32 %v327_v17, %v348_v38 }
  0x9c   : > { %376 = vst.msk [vmem:[%s211_s28 + $0x20] sm:$0xff] %vm371_vm0, %v367_v33  ;;  %v354_v37 = vpop.permute.xlu1 %353 }
  0x9d   : > { %v370_v39 = vmax.f32 %v330_v23, %v354_v37 }
  0x9f   : > { %379 = vst.msk [vmem:[%s211_s28 + $0x38] sm:$0xff] %vm371_vm0, %v370_v39  ;;  %v352_v40 = vpop.permute.xlu0 %351 }
  0xa0   : > { %v369_v41 = vmax.f32 %v329_v26, %v352_v40 }
  0xa2   : > { %378 = vst.msk [vmem:[%s211_s28 + $0x30] sm:$0xff] %vm371_vm0, %v369_v41 }
  0xa3 PF: > { %s13_s14 = sadd.s32 1, %s532_s14   ;;  %s685_s12 = smov %s528_s13 }
  0xa4   : > { %p10_p5 = scmp.ge.s32.totalorder %s13_s14, 4   ;;  %s686_s13 = smov %s688_s15 }
  0xa6   :  { %12 = sbr.rel (!%p10_p5) target bundleno = 2 (0x2), region = 62 }

// kernel: conv_block_forward.2
= control target key start
LH: loop header
LB: loop body
LE: loop exit
PB: predicated region body
PF: predicated region fallthrough
CT: control target
= control target key end

     0   :  { %s1401_s15 = smov 0   ;;  %s1403_s16 = smov 0   ;;  %s1767_s0 = inlined_call_operand.vmem [shape: bf16[512,36], index: 0, kind: input, shape index: {}]   ;;  %s1768_s1 = inlined_call_operand.vmem [shape: bf16[36,8], index: 1, kind: input, shape index: {}]   ;;  %s1769_s2 = inlined_call_operand.vmem [shape: f32[512,8], index: 2, kind: output, shape index: {0}]   ;;  %s1770_s3 = inlined_call_operand.vmem [shape: f32[2,1,8], index: 3, kind: output, shape index: {1}]   ;;  %s1771_s4 = inlined_call_operand.vmem [shape: f32[2,1,8], index: 4, kind: output, shape index: {2}]  }
   0x1   :  { %s1405_s17 = smov 0  }
   0x2 LB: > { %s34_s18 = sadd.s32 1, %s1369_s16  ;;  %p1200_p0 = scmp.ge.s32.totalorder %s1373_s17, 1  ;;  %s1373_s17 = sphi %s1405_s17, %s15_s17   ;;  %s1369_s16 = sphi %s1403_s16, %s1773_s16   ;;  %s1365_s15 = sphi %s1401_s15, %s1772_s15  }
   0x3   : > { %p36_p1 = scmp.ge.s32.totalorder %s34_s18, 2  ;;  %p214_p2 = scmp.lt.s32.totalorder %s1373_s17, 3 }
   0x5   : > { %s1775_s18 = smov (%p36_p1, %s34_s18), 0  ;;  %p215_p3 = pnand %p1200_p0, %p214_p2 }
   0x6   : > { %v1332_v0 = vld [vmem:[%s1768_s1] sm:$0xff] (!%p215_p3)   ;;  %v1333_v1 = vld [vmem:[%s1768_s1 + $0x8] sm:$0xff] (!%p215_p3)   ;;  %s1201_s23 = sshll.u32 (!%p215_p3), %s1365_s15, 5  ;;  %vm310_vm0 = vcmask (!%p215_p3), 64512   ;;  %v1375_v3 = vmov (!%p215_p3), 0.0   ;;  %vm556_vm1 = vcmask (!%p215_p3), 1041408  }
   0x7   : > { %218 = sbr.rel (%p215_p3) target bundleno = 322 (0x142), region = 28  ;;  %1261 = vmatprep.subr.bf16.mxu0 (!%p215_p3), %v1332_v0  ;;  %p267_p4 = scmp.lt.s32.totalorder (!%p215_p3), %s1201_s23, 63  ;;  %1299 = vmatprep.subr.bf16.mxu1 (!%p215_p3), %v1332_v0  ;;  %v1334_v2 = vld [vmem:[%s1768_s1 + $0x10] ss:$0 sps:$4 sm:$0x33] (!%p215_p3)   ;;  %313 = vst.msk [vmem:[#allocation2 + $0x10] sm:$0xff] (!%p215_p3), %vm310_vm0, %v1375_v3 }
   0x8   : > { %1262 = vmatpush3.bf16.msra.mxu0 (!%p215_p3), %v1332_v0  ;;  %1302 = vmatpush3.bf16.msra.mxu1 (!%p215_p3), %v1332_v0  ;;  %311 = vst.msk [vmem:[#allocation2] sm:$0xff] (!%p215_p3), %vm310_vm0, %v1375_v3  ;;  %312 = vst.msk [vmem:[#allocation2 + $0x8] sm:$0xff] (!%p215_p3), %vm310_vm0, %v1375_v3  ;;  %vm507_vm2 = vcmask (!%p215_p3), 293888   ;;  %v558_v4 = vsel (!%p215_p3), %vm556_vm1, %v1334_v2, 0  ;;  %p293_p5 = scmp.lt.s32.totalorder (!%p215_p3), %s1365_s15, 1  ;;  %vm922_vm3 = vcmask (!%p215_p3), 57344  }
   0x9   : > { %1263 = vmatprep.subr.bf16.mxu0 (!%p215_p3), %v1333_v1  ;;  %1300 = vmatprep.subr.bf16.mxu1 (!%p215_p3), %v1333_v1  ;;  %314 = vst.msk [vmem:[#allocation2 + $0x18] sm:$0xff] (!%p215_p3), %vm310_vm0, %v1375_v3  ;;  %315 = vst.msk [vmem:[#allocation2 + $0x20] sm:$0xff] (!%p215_p3), %vm310_vm0, %v1375_v3 }
   0xa   : > { %316 = vst.msk [vmem:[#allocation2 + $0x28] sm:$0xff] (!%p215_p3), %vm310_vm0, %v1375_v3  ;;  %317 = vst.msk [vmem:[#allocation2 + $0x30] sm:$0xff] (!%p215_p3), %vm310_vm0, %v1375_v3 }
   0xb   : > { %318 = vst.msk [vmem:[#allocation2 + $0x38] sm:$0xff] (!%p215_p3), %vm310_vm0, %v1375_v3  ;;  %319 = vst.msk [vmem:[#allocation2 + $0x40] sm:$0xff] (!%p215_p3), %vm310_vm0, %v1375_v3 }
   0xc   : > { %320 = vst.msk [vmem:[#allocation2 + $0x48] sm:$0xff] (!%p215_p3), %vm310_vm0, %v1375_v3  ;;  %321 = vst.msk [vmem:[#allocation2 + $0x50] sm:$0xff] (!%p215_p3), %vm310_vm0, %v1375_v3  ;;  %1264 = vmatpush3.bf16.msra.mxu0 (!%p215_p3), %v1333_v1  ;;  %1303 = vmatpush3.bf16.msra.mxu1 (!%p215_p3), %v1333_v1 }
   0xd   : > { %322 = vst.msk [vmem:[#allocation2 + $0x58] sm:$0xff] (!%p215_p3), %vm310_vm0, %v1375_v3  ;;  %323 = vst.msk [vmem:[#allocation2 + $0x60] sm:$0xff] (!%p215_p3), %vm310_vm0, %v1375_v3  ;;  %1305 = vmatprep.subr.msk.bf16.mxu0 (!%p215_p3), %vm556_vm1, %v1334_v2  ;;  %1306 = vmatprep.subr.msk.bf16.mxu1 (!%p215_p3), %vm556_vm1, %v1334_v2 }
   0xe   : > { %s1777_s23 = smov (!%p267_p4, %s1201_s23), 63  ;;  %324 = vst.msk [vmem:[#allocation2 + $0x68] sm:$0xff] %vm310_vm0, %v1375_v3  ;;  %325 = vst.msk [vmem:[#allocation2 + $0x70] sm:$0xff] %vm310_vm0, %v1375_v3  ;;  %v345_v21 = vld [vmem:[#allocation2 + $0x10] sm:$0xff]  ;;  %s1779_s15 = smov (!%p293_p5, %s1365_s15), 1 }
   0xf   : > { %326 = vst.msk [vmem:[#allocation2 + $0x78] sm:$0xff] %vm310_vm0, %v1375_v3  ;;  %327 = vst.msk [vmem:[#allocation2 + $0x80] sm:$0xff] %vm310_vm0, %v1375_v3  ;;  %s1202_s26 = sshll.u32 %s1777_s23, 2  ;;  %v343_v22 = vld [vmem:[#allocation2] sm:$0xff]  ;;  %v344_v27 = vld [vmem:[#allocation2 + $0x8] sm:$0xff]  ;;  %s1204_s30 = sshll.u32 %s1777_s23, 3 }
  0x10   : > { %328 = vst.msk [vmem:[#allocation2 + $0x88] sm:$0xff] %vm310_vm0, %v1375_v3  ;;  %329 = vst.msk [vmem:[#allocation2 + $0x90] sm:$0xff] %vm310_vm0, %v1375_v3  ;;  %s1469_s29 = scalar_lea.vmem %s1767_s0, %s1202_s26  ;;  %1266 = vmatpush3.bf16.msra.mxu0 %v558_v4  ;;  %1304 = vmatpush3.bf16.msra.mxu1 %v558_v4  ;;  %v346_v24 = vld [vmem:[#allocation2 + $0x18] sm:$0xff]  ;;  %v347_v41 = vld [vmem:[#allocation2 + $0x20] sm:$0xff]  ;;  %s1511_s7 = scalar_lea.vmem %s1769_s2, %s1204_s30 }
  0x11   : > { %330 = vst.msk [vmem:[#allocation2 + $0x98] sm:$0xff] %vm310_vm0, %v1375_v3  ;;  %331 = vst.msk [vmem:[#allocation2 + $0xa0] sm:$0xff] %vm310_vm0, %v1375_v3  ;;  %v1335_v5 = vld [vmem:[%s1469_s29] sm:$0xff]   ;;  %v1336_v6 = vld [vmem:[%s1469_s29 + $0x8] sm:$0xff]   ;;  %s298_s10 = scalar_lea.vmem %s1770_s3, %s1779_s15  ;;  %s304_s13 = scalar_lea.vmem %s1771_s4, %s1779_s15 }
  0x12   : > { %332 = vst.msk [vmem:[#allocation2 + $0xa8] sm:$0xff] %vm310_vm0, %v1375_v3  ;;  %333 = vst.msk [vmem:[#allocation2 + $0xb0] sm:$0xff] %vm310_vm0, %v1375_v3  ;;  %1267 = vmatprep.mubr.msk.bf16.mxu0 %vm507_vm2, %v1335_v5  ;;  %v1337_v7 = vld [vmem:[%s1469_s29 + $0x10] sm:$0xff]   ;;  %v1338_v8 = vld [vmem:[%s1469_s29 + $0x18] sm:$0xff]  }
  0x13   : > { %334 = vst.msk [vmem:[#allocation2 + $0xb8] sm:$0xff] %vm310_vm0, %v1375_v3  ;;  %335 = vst.msk [vmem:[#allocation2 + $0xc0] sm:$0xff] %vm310_vm0, %v1375_v3  ;;  %1268 = vmatmul.mubr.msk.bf16.vlgmr.msra.gmra.mrb[0].mxu0 %vm507_vm2, %v1336_v6  ;;  %v1343_v9 = vld [vmem:[%s1469_s29 + $0x40] sm:$0xff]   ;;  %v1344_v10 = vld [vmem:[%s1469_s29 + $0x48] sm:$0xff]  }
  0x14   : > { %336 = vst.msk [vmem:[#allocation2 + $0xc8] sm:$0xff] %vm310_vm0, %v1375_v3  ;;  %337 = vst.msk [vmem:[#allocation2 + $0xd0] sm:$0xff] %vm310_vm0, %v1375_v3  ;;  %1271 = vmatprep.mubr.msk.bf16.mxu0 %vm507_vm2, %v1337_v7  ;;  %1283 = vmatprep.mubr.msk.bf16.mxu1 %vm507_vm2, %v1343_v9  ;;  %v1345_v11 = vld [vmem:[%s1469_s29 + $0x50] sm:$0xff]   ;;  %v1339_v12 = vld [vmem:[%s1469_s29 + $0x20] sm:$0xff]  }
  0x15   : > { %338 = vst.msk [vmem:[#allocation2 + $0xd8] sm:$0xff] %vm310_vm0, %v1375_v3  ;;  %339 = vst.msk [vmem:[#allocation2 + $0xe0] sm:$0xff] %vm310_vm0, %v1375_v3  ;;  %1284 = vmatmul.mubr.msk.bf16.vlgmr.msra.gmra.mrb[0].mxu1 %vm507_vm2, %v1344_v10  ;;  %v1346_v13 = vld [vmem:[%s1469_s29 + $0x58] sm:$0xff]   ;;  %v1347_v14 = vld [vmem:[%s1469_s29 + $0x60] sm:$0xff]  }
  0x16   : > { %340 = vst.msk [vmem:[#allocation2 + $0xe8] sm:$0xff] %vm310_vm0, %v1375_v3  ;;  %341 = vst.msk [vmem:[#allocation2 + $0xf0] sm:$0xff] %vm310_vm0, %v1375_v3  ;;  %1287 = vmatprep.mubr.msk.bf16.mxu1 %vm507_vm2, %v1345_v11  ;;  %v1340_v15 = vld [vmem:[%s1469_s29 + $0x28] sm:$0xff]   ;;  %v1341_v16 = vld [vmem:[%s1469_s29 + $0x30] sm:$0xff]  }
  0x17   : > { %342 = vst.msk [vmem:[#allocation2 + $0xf8] sm:$0xff] %vm310_vm0, %v1375_v3  ;;  %v1348_v17 = vld [vmem:[%s1469_s29 + $0x68] sm:$0xff]   ;;  %v1349_v18 = vld [vmem:[%s1469_s29 + $0x70] sm:$0xff]   ;;  %v1342_v19 = vld [vmem:[%s1469_s29 + $0x38] sm:$0xff]  }
  0x18   : > { %v1350_v20 = vld [vmem:[%s1469_s29 + $0x78] sm:$0xff]   ;;  %v361_v32 = vld [vmem:[#allocation2 + $0x90] sm:$0xff]  ;;  %v359_v34 = vld [vmem:[#allocation2 + $0x80] sm:$0xff] }
  0x19   : > { %v362_v36 = vld [vmem:[#allocation2 + $0x98] sm:$0xff]  ;;  %v349_v37 = vld [vmem:[#allocation2 + $0x30] sm:$0xff]  ;;  %v360_v40 = vld [vmem:[#allocation2 + $0x88] sm:$0xff] }
  0x1a   : > { %v350_v45 = vld [vmem:[#allocation2 + $0x38] sm:$0xff]  ;;  %v348_v50 = vld [vmem:[#allocation2 + $0x28] sm:$0xff]  ;;  %v365_v58 = vld [vmem:[#allocation2 + $0xb0] sm:$0xff] }
  0x1b   : > { %1272 = vmatmul.mubr.msk.bf16.gmra.mrb[4].mxu0 %vm507_vm2, %v1338_v8  ;;  %v363_v62 = vld [vmem:[#allocation2 + $0xa0] sm:$0xff]  ;;  %v366_v2 = vld [vmem:[#allocation2 + $0xb8] sm:$0xff]  ;;  %v353_v6 = vld [vmem:[#allocation2 + $0x50] sm:$0xff] }
  0x1c   : > { %1275 = vmatprep.mubr.msk.bf16.mxu0 %vm507_vm2, %v1339_v12  ;;  %v351_v11 = vld [vmem:[#allocation2 + $0x40] sm:$0xff] }
  0x1d   : > { %1288 = vmatmul.mubr.msk.bf16.gmra.mrb[4].mxu1 %vm507_vm2, %v1346_v13 }
  0x1e   : > { %1291 = vmatprep.mubr.msk.bf16.mxu1 %vm507_vm2, %v1347_v14 }
  0x23   : > { %1276 = vmatmul.mubr.msk.bf16.gmra.mrb[8].mxu0 %vm507_vm2, %v1340_v15 }
  0x24   : > { %1279 = vmatprep.mubr.msk.bf16.mxu0 %vm507_vm2, %v1341_v16 }
  0x25   : > { %1292 = vmatmul.mubr.msk.bf16.gmra.mrb[8].mxu1 %vm507_vm2, %v1348_v17 }
  0x26   : > { %1295 = vmatprep.mubr.msk.bf16.mxu1 %vm507_vm2, %v1349_v18 }
  0x2b   : > { %1280 = vmatmul.mubr.msk.bf16.gmra.mrb[12].mxu0 %vm507_vm2, %v1342_v19 }
  0x2d   : > { %1296 = vmatmul.mubr.msk.bf16.gmra.mrb[12].mxu1 %vm507_vm2, %v1350_v20 }
  0xe6   : > { %v1269_v23 = vpop.f32.mrb[0].mxu0 }
  0xe7   : > { %v723_v25 = vadd.f32 %v1269_v23, %v345_v21  ;;  %v594_v26 = vpop.f32.mrb[1].mxu0 }
  0xe8   : > { %v721_v28 = vadd.f32 %v594_v26, %v343_v22  ;;  %v1270_v29 = vpop.f32.mrb[2].mxu0  ;;  %v1285_v35 = vpop.f32.mrb[0].mxu1  ;;  %v354_v26 = vld [vmem:[#allocation2 + $0x58] sm:$0xff] }
  0xe9   : > { %756 = vst.msk [vmem:[#allocation2 + $0x10] sm:$0xff] %vm310_vm0, %v723_v25  ;;  %v724_v30 = vadd.f32 %v1270_v29, %v346_v24  ;;  %v597_v31 = vpop.f32.mrb[3].mxu0  ;;  %v739_v38 = vadd.f32 %v1285_v35, %v361_v32  ;;  %v658_v39 = vpop.f32.mrb[1].mxu1 }
  0xea   : > { %754 = vst.msk [vmem:[#allocation2] sm:$0xff] %vm310_vm0, %v721_v28  ;;  %v722_v33 = vadd.f32 %v597_v31, %v344_v27  ;;  %v737_v42 = vadd.f32 %v658_v39, %v359_v34  ;;  %v1286_v43 = vpop.f32.mrb[2].mxu1  ;;  %v352_v27 = vld [vmem:[#allocation2 + $0x48] sm:$0xff] }
  0xeb   : > { %757 = vst.msk [vmem:[#allocation2 + $0x18] sm:$0xff] %vm310_vm0, %v724_v30  ;;  %772 = vst.msk [vmem:[#allocation2 + $0x90] sm:$0xff] %vm310_vm0, %v739_v38  ;;  %v740_v46 = vadd.f32 %v1286_v43, %v362_v36  ;;  %v661_v47 = vpop.f32.mrb[3].mxu1 }
  0xec   : > { %755 = vst.msk [vmem:[#allocation2 + $0x8] sm:$0xff] %vm310_vm0, %v722_v33  ;;  %770 = vst.msk [vmem:[#allocation2 + $0x80] sm:$0xff] %vm310_vm0, %v737_v42  ;;  %v738_v51 = vadd.f32 %v661_v47, %v360_v40 }
  0xed   : > { %773 = vst.msk [vmem:[#allocation2 + $0x98] sm:$0xff] %vm310_vm0, %v740_v46 }
  0xee   : > { %v1273_v44 = vpop.f32.mrb[4].mxu0  ;;  %771 = vst.msk [vmem:[#allocation2 + $0x88] sm:$0xff] %vm310_vm0, %v738_v51 }
  0xef   : > { %v727_v48 = vadd.f32 %v1273_v44, %v349_v37  ;;  %v610_v49 = vpop.f32.mrb[5].mxu0 }
  0xf0   : > { %v791_v52 = vld [vmem:[#allocation2 + $0x10] sm:$0xff]  ;;  %v725_v53 = vadd.f32 %v610_v49, %v347_v41  ;;  %v1274_v54 = vpop.f32.mrb[6].mxu0  ;;  %v1289_v1 = vpop.f32.mrb[4].mxu1 }
  0xf1   : > { %823 = vst.msk [vmem:[%s1511_s7 + $0x10] sm:$0xff] %vm310_vm0, %v791_v52  ;;  %v789_v55 = vld [vmem:[#allocation2] sm:$0xff]  ;;  %760 = vst.msk [vmem:[#allocation2 + $0x30] sm:$0xff] %vm310_vm0, %v727_v48  ;;  %v728_v56 = vadd.f32 %v1274_v54, %v350_v45  ;;  %v613_v57 = vpop.f32.mrb[7].mxu0  ;;  %v926_v63 = vmul.f32 %v791_v52, %v791_v52  ;;  %v743_v7 = vadd.f32 %v1289_v1, %v365_v58  ;;  %v674_v8 = vpop.f32.mrb[5].mxu1  ;;  %v856_v15 = vsel %vm310_vm0, %v791_v52, 0.0 }
  0xf2   : > { %821 = vst.msk [vmem:[%s1511_s7] sm:$0xff] %vm310_vm0, %v789_v55  ;;  %v924_v59 = vmul.f32 %v789_v55, %v789_v55  ;;  %v792_v60 = vld [vmem:[#allocation2 + $0x18] sm:$0xff]  ;;  %758 = vst.msk [vmem:[#allocation2 + $0x20] sm:$0xff] %vm310_vm0, %v725_v53  ;;  %v726_v61 = vadd.f32 %v613_v57, %v348_v50  ;;  %v853_v3 = vsel %vm310_vm0, %v789_v55, 0.0  ;;  %v1531_v12 = vld [vmem:[#allocation2 + $0x90] sm:$0xff]  ;;  %v741_v13 = vadd.f32 %v674_v8, %v363_v62  ;;  %v1290_v14 = vpop.f32.mrb[6].mxu1 }
  0xf3   : > { %824 = vst.msk [vmem:[%s1511_s7 + $0x18] sm:$0xff] %vm310_vm0, %v792_v60  ;;  %v790_v0 = vld [vmem:[#allocation2 + $0x8] sm:$0xff]  ;;  %761 = vst.msk [vmem:[#allocation2 + $0x38] sm:$0xff] %vm310_vm0, %v728_v56  ;;  %v927_v9 = vmul.f32 %v792_v60, %v792_v60  ;;  %v1539_v19 = vld [vmem:[#allocation2 + $0x80] sm:$0xff]  ;;  %v744_v20 = vadd.f32 %v1290_v14, %v366_v2  ;;  %v1542_v21 = vpop.f32.mrb[7].mxu1  ;;  %v959_v29 = vsel %vm310_vm0, %v926_v63, 0.0 }
  0xf4   : > { %822 = vst.msk [vmem:[%s1511_s7 + $0x8] sm:$0xff] %vm310_vm0, %v790_v0  ;;  %v854_v4 = vsel %vm310_vm0, %v790_v0, 0.0  ;;  %v925_v5 = vmul.f32 %v790_v0, %v790_v0  ;;  %759 = vst.msk [vmem:[#allocation2 + $0x28] sm:$0xff] %vm310_vm0, %v726_v61  ;;  %v956_v16 = vsel %vm310_vm0, %v924_v59, 0.0  ;;  %v1547_v28 = vld [vmem:[#allocation2 + $0x98] sm:$0xff]  ;;  %v858_v30 = vsel %vm310_vm0, %v792_v60, 0.0 }
  0xf5   : > { %v855_v10 = vadd.f32 %v854_v4, %v853_v3  ;;  %839 = vst.msk [vmem:[%s1511_s7 + $0x90] sm:$0xff] %vm310_vm0, %v1531_v12  ;;  %776 = vst.msk [vmem:[#allocation2 + $0xb0] sm:$0xff] %vm310_vm0, %v743_v7  ;;  %v1555_v34 = vld [vmem:[#allocation2 + $0x88] sm:$0xff]  ;;  %v961_v35 = vsel %vm310_vm0, %v927_v9, 0.0  ;;  %v357_v53 = vld [vmem:[#allocation2 + $0x70] sm:$0xff] }
  0xf6   : > { %v957_v17 = vsel %vm310_vm0, %v925_v5, 0.0  ;;  %v1277_v18 = vpop.f32.mrb[8].mxu0  ;;  %837 = vst.msk [vmem:[%s1511_s7 + $0x80] sm:$0xff] %vm310_vm0, %v1539_v19  ;;  %774 = vst.msk [vmem:[#allocation2 + $0xa0] sm:$0xff] %vm310_vm0, %v741_v13  ;;  %v355_v58 = vld [vmem:[#allocation2 + $0x60] sm:$0xff]  ;;  %v356_v7 = vld [vmem:[#allocation2 + $0x68] sm:$0xff] }
  0xf7   : > { %v857_v22 = vadd.f32 %v856_v15, %v855_v10  ;;  %v958_v23 = vadd.f32 %v957_v17, %v956_v16  ;;  %v731_v24 = vadd.f32 %v1277_v18, %v353_v6  ;;  %v626_v25 = vpop.f32.mrb[9].mxu0  ;;  %840 = vst.msk [vmem:[%s1511_s7 + $0x98] sm:$0xff] %vm310_vm0, %v1547_v28  ;;  %777 = vst.msk [vmem:[#allocation2 + $0xb8] sm:$0xff] %vm310_vm0, %v744_v20  ;;  %v358_v6 = vld [vmem:[#allocation2 + $0x78] sm:$0xff] }
  0xf8   : > { %v795_v31 = vld [vmem:[#allocation2 + $0x30] sm:$0xff]  ;;  %v729_v32 = vadd.f32 %v626_v25, %v351_v11  ;;  %v1278_v33 = vpop.f32.mrb[10].mxu0  ;;  %838 = vst.msk [vmem:[%s1511_s7 + $0x88] sm:$0xff] %vm310_vm0, %v1555_v34  ;;  %v1571_v48 = vpop.f32.mrb[8].mxu1 }
  0xf9   : > { %v960_v36 = vadd.f32 %v959_v29, %v958_v23  ;;  %827 = vst.msk [vmem:[%s1511_s7 + $0x30] sm:$0xff] %vm310_vm0, %v795_v31  ;;  %v793_v37 = vld [vmem:[#allocation2 + $0x20] sm:$0xff]  ;;  %v859_v38 = vadd.f32 %v858_v30, %v857_v22  ;;  %764 = vst.msk [vmem:[#allocation2 + $0x50] sm:$0xff] %vm310_vm0, %v731_v24  ;;  %v629_v39 = vpop.f32.mrb[11].mxu0  ;;  %v732_v43 = vadd.f32 %v1278_v33, %v354_v26  ;;  %v1579_v54 = vpop.f32.mrb[9].mxu1  ;;  %v864_v61 = vsel %vm310_vm0, %v795_v31, 0.0 }
  0xfa   : > { %825 = vst.msk [vmem:[%s1511_s7 + $0x20] sm:$0xff] %vm310_vm0, %v793_v37  ;;  %v860_v40 = vsel %vm310_vm0, %v793_v37, 0.0  ;;  %v928_v41 = vmul.f32 %v793_v37, %v793_v37  ;;  %v796_v42 = vld [vmem:[#allocation2 + $0x38] sm:$0xff]  ;;  %762 = vst.msk [vmem:[#allocation2 + $0x40] sm:$0xff] %vm310_vm0, %v729_v32  ;;  %v730_v44 = vadd.f32 %v629_v39, %v352_v27  ;;  %v930_v49 = vmul.f32 %v795_v31, %v795_v31  ;;  %v1583_v60 = vpop.f32.mrb[10].mxu1 }
  0xfb   : > { %v861_v45 = vadd.f32 %v860_v40, %v859_v38  ;;  %v962_v46 = vadd.f32 %v961_v35, %v960_v36  ;;  %828 = vst.msk [vmem:[%s1511_s7 + $0x38] sm:$0xff] %vm310_vm0, %v796_v42  ;;  %v794_v47 = vld [vmem:[#allocation2 + $0x28] sm:$0xff]  ;;  %765 = vst.msk [vmem:[#allocation2 + $0x58] sm:$0xff] %vm310_vm0, %v732_v43  ;;  %v931_v56 = vmul.f32 %v796_v42, %v796_v42  ;;  %v1592_v1 = vpop.f32.mrb[11].mxu1  ;;  %v866_v10 = vsel %vm310_vm0, %v796_v42, 0.0  ;;  %v369_v36 = vld [vmem:[#allocation2 + $0xd0] sm:$0xff] }
  0xfc   : > { %v963_v50 = vsel %vm310_vm0, %v928_v41, 0.0  ;;  %826 = vst.msk [vmem:[%s1511_s7 + $0x28] sm:$0xff] %vm310_vm0, %v794_v47  ;;  %v862_v51 = vsel %vm310_vm0, %v794_v47, 0.0  ;;  %v929_v52 = vmul.f32 %v794_v47, %v794_v47  ;;  %763 = vst.msk [vmem:[#allocation2 + $0x48] sm:$0xff] %vm310_vm0, %v730_v44  ;;  %v1581_v59 = vld [vmem:[#allocation2 + $0xb0] sm:$0xff]  ;;  %v967_v9 = vsel %vm310_vm0, %v930_v49, 0.0 }
  0xfd   : > { %v964_v55 = vadd.f32 %v963_v50, %v962_v46  ;;  %v863_v57 = vadd.f32 %v862_v51, %v861_v45  ;;  %843 = vst.msk [vmem:[%s1511_s7 + $0xb0] sm:$0xff] %vm310_vm0, %v1581_v59  ;;  %v1590_v0 = vld [vmem:[#allocation2 + $0xa0] sm:$0xff]  ;;  %v969_v15 = vsel %vm310_vm0, %v931_v56, 0.0  ;;  %v364_v35 = vld [vmem:[#allocation2 + $0xa8] sm:$0xff]  ;;  %v370_v46 = vld [vmem:[#allocation2 + $0xd8] sm:$0xff] }
  0xfe   : > { %v965_v62 = vsel %vm310_vm0, %v929_v52, 0.0  ;;  %v1281_v63 = vpop.f32.mrb[12].mxu0  ;;  %841 = vst.msk [vmem:[%s1511_s7 + $0xa0] sm:$0xff] %vm310_vm0, %v1590_v0  ;;  %v1597_v8 = vld [vmem:[#allocation2 + $0xb8] sm:$0xff]  ;;  %v367_v42 = vld [vmem:[#allocation2 + $0xc0] sm:$0xff]  ;;  %v742_v51 = vadd.f32 %v1542_v21, %v364_v35  ;;  %v747_v52 = vadd.f32 %v1571_v48, %v369_v36  ;;  %v748_v21 = vadd.f32 %v1583_v60, %v370_v46 }
  0xff   : > { %v865_v2 = vadd.f32 %v864_v61, %v863_v57  ;;  %v966_v3 = vadd.f32 %v965_v62, %v964_v55  ;;  %v735_v4 = vadd.f32 %v1281_v63, %v357_v53  ;;  %v642_v5 = vpop.f32.mrb[13].mxu0  ;;  %844 = vst.msk [vmem:[%s1511_s7 + $0xb8] sm:$0xff] %vm310_vm0, %v1597_v8  ;;  %v368_v53 = vld [vmem:[#allocation2 + $0xc8] sm:$0xff]  ;;  %v373_v61 = vld [vmem:[#allocation2 + $0xf0] sm:$0xff]  ;;  %v371_v62 = vld [vmem:[#allocation2 + $0xe0] sm:$0xff] }
 0x100   : > { %v799_v11 = vld [vmem:[#allocation2 + $0x50] sm:$0xff]  ;;  %v733_v13 = vadd.f32 %v642_v5, %v355_v58  ;;  %v1282_v14 = vpop.f32.mrb[14].mxu0  ;;  %v1297_v31 = vpop.f32.mrb[12].mxu1  ;;  %v745_v58 = vadd.f32 %v1579_v54, %v367_v42  ;;  %775 = vst.msk [vmem:[#allocation2 + $0xa8] sm:$0xff] %vm310_vm0, %v742_v51  ;;  %780 = vst.msk [vmem:[#allocation2 + $0xd0] sm:$0xff] %vm310_vm0, %v747_v52  ;;  %v746_v5 = vadd.f32 %v1592_v1, %v368_v53  ;;  %v886_v51 = vsel %vm310_vm0, %v1555_v34, 0.0 }
 0x101   : > { %v968_v16 = vadd.f32 %v967_v9, %v966_v3  ;;  %831 = vst.msk [vmem:[%s1511_s7 + $0x50] sm:$0xff] %vm310_vm0, %v799_v11  ;;  %v797_v17 = vld [vmem:[#allocation2 + $0x40] sm:$0xff]  ;;  %v867_v18 = vadd.f32 %v866_v10, %v865_v2  ;;  %768 = vst.msk [vmem:[#allocation2 + $0x70] sm:$0xff] %vm310_vm0, %v735_v4  ;;  %v645_v20 = vpop.f32.mrb[15].mxu0  ;;  %v736_v24 = vadd.f32 %v1282_v14, %v358_v6  ;;  %v706_v37 = vpop.f32.mrb[13].mxu1  ;;  %v872_v44 = vsel %vm310_vm0, %v799_v11, 0.0 }
 0x102   : > { %829 = vst.msk [vmem:[%s1511_s7 + $0x40] sm:$0xff] %vm310_vm0, %v797_v17  ;;  %v868_v22 = vsel %vm310_vm0, %v797_v17, 0.0  ;;  %v932_v23 = vmul.f32 %v797_v17, %v797_v17  ;;  %766 = vst.msk [vmem:[#allocation2 + $0x60] sm:$0xff] %vm310_vm0, %v733_v13  ;;  %v734_v25 = vadd.f32 %v645_v20, %v356_v7  ;;  %v800_v29 = vld [vmem:[#allocation2 + $0x58] sm:$0xff]  ;;  %v934_v38 = vmul.f32 %v799_v11, %v799_v11  ;;  %v1298_v43 = vpop.f32.mrb[14].mxu1  ;;  %v372_v7 = vld [vmem:[#allocation2 + $0xe8] sm:$0xff] }
 0x103   : > { %v869_v26 = vadd.f32 %v868_v22, %v867_v18  ;;  %v970_v27 = vadd.f32 %v969_v15, %v968_v16  ;;  %v798_v30 = vld [vmem:[#allocation2 + $0x48] sm:$0xff]  ;;  %832 = vst.msk [vmem:[%s1511_s7 + $0x58] sm:$0xff] %vm310_vm0, %v800_v29  ;;  %769 = vst.msk [vmem:[#allocation2 + $0x78] sm:$0xff] %vm310_vm0, %v736_v24  ;;  %v935_v45 = vmul.f32 %v800_v29, %v800_v29  ;;  %v709_v47 = vpop.f32.mrb[15].mxu1  ;;  %v874_v55 = vsel %vm310_vm0, %v800_v29, 0.0  ;;  %v374_v6 = vld [vmem:[#allocation2 + $0xf8] sm:$0xff] }
 0x104   : > { %v971_v32 = vsel %vm310_vm0, %v932_v23, 0.0  ;;  %830 = vst.msk [vmem:[%s1511_s7 + $0x48] sm:$0xff] %vm310_vm0, %v798_v30  ;;  %v870_v33 = vsel %vm310_vm0, %v798_v30, 0.0  ;;  %767 = vst.msk [vmem:[#allocation2 + $0x68] sm:$0xff] %vm310_vm0, %v734_v25  ;;  %v933_v41 = vmul.f32 %v798_v30, %v798_v30  ;;  %v975_v63 = vsel %vm310_vm0, %v934_v38, 0.0 }
 0x105   : > { %v972_v39 = vadd.f32 %v971_v32, %v970_v27  ;;  %v871_v40 = vadd.f32 %v870_v33, %v869_v26  ;;  %778 = vst.msk [vmem:[#allocation2 + $0xc0] sm:$0xff] %vm310_vm0, %v745_v58  ;;  %v977_v9 = vsel %vm310_vm0, %v935_v45, 0.0  ;;  %781 = vst.msk [vmem:[#allocation2 + $0xd8] sm:$0xff] %vm310_vm0, %v748_v21  ;;  %v751_v60 = vadd.f32 %v1297_v31, %v373_v61 }
 0x106   : > { %v973_v50 = vsel %vm310_vm0, %v933_v41, 0.0  ;;  %v749_v14 = vadd.f32 %v706_v37, %v371_v62  ;;  %779 = vst.msk [vmem:[#allocation2 + $0xc8] sm:$0xff] %vm310_vm0, %v746_v5  ;;  %v752_v20 = vadd.f32 %v1298_v43, %v374_v6  ;;  %v750_v22 = vadd.f32 %v709_v47, %v372_v7 }
 0x107   : > { %v873_v49 = vadd.f32 %v872_v44, %v871_v40  ;;  %v974_v56 = vadd.f32 %v973_v50, %v972_v39  ;;  %784 = vst.msk [vmem:[#allocation2 + $0xf0] sm:$0xff] %vm310_vm0, %v751_v60  ;;  %v940_v29 = vmul.f32 %v1539_v19, %v1539_v19  ;;  %v810_v32 = vld [vmem:[#allocation2 + $0xa8] sm:$0xff]  ;;  %v1654_v33 = vld [vmem:[#allocation2 + $0xd0] sm:$0xff]  ;;  %v884_v37 = vsel %vm310_vm0, %v1539_v19, 0.0 }
 0x108   : > { %v803_v57 = vld [vmem:[#allocation2 + $0x70] sm:$0xff]  ;;  %782 = vst.msk [vmem:[#allocation2 + $0xe0] sm:$0xff] %vm310_vm0, %v749_v14  ;;  %785 = vst.msk [vmem:[#allocation2 + $0xf8] sm:$0xff] %vm310_vm0, %v752_v20  ;;  %v941_v19 = vmul.f32 %v1555_v34, %v1555_v34  ;;  %v942_v50 = vmul.f32 %v1531_v12, %v1531_v12  ;;  %v943_v58 = vmul.f32 %v1547_v28, %v1547_v28 }
 0x109   : > { %835 = vst.msk [vmem:[%s1511_s7 + $0x70] sm:$0xff] %vm310_vm0, %v803_v57  ;;  %v801_v2 = vld [vmem:[#allocation2 + $0x60] sm:$0xff]  ;;  %v875_v3 = vadd.f32 %v874_v55, %v873_v49  ;;  %v976_v48 = vadd.f32 %v975_v63, %v974_v56  ;;  %v938_v15 = vmul.f32 %v803_v57, %v803_v57  ;;  %v880_v25 = vsel %vm310_vm0, %v803_v57, 0.0  ;;  %783 = vst.msk [vmem:[#allocation2 + $0xe8] sm:$0xff] %vm310_vm0, %v750_v22 }
 0x10a   : > { %833 = vst.msk [vmem:[%s1511_s7 + $0x60] sm:$0xff] %vm310_vm0, %v801_v2  ;;  %v876_v4 = vsel %vm310_vm0, %v801_v2, 0.0  ;;  %v936_v54 = vmul.f32 %v801_v2, %v801_v2  ;;  %v804_v11 = vld [vmem:[#allocation2 + $0x78] sm:$0xff]  ;;  %842 = vst.msk [vmem:[%s1511_s7 + $0xa8] sm:$0xff] %vm310_vm0, %v810_v32  ;;  %v987_v43 = vsel %vm310_vm0, %v940_v29, 0.0  ;;  %v888_v57 = vsel %vm310_vm0, %v1531_v12, 0.0 }
 0x10b   : > { %v877_v10 = vadd.f32 %v876_v4, %v875_v3  ;;  %v802_v13 = vld [vmem:[#allocation2 + $0x68] sm:$0xff]  ;;  %v978_v16 = vadd.f32 %v977_v9, %v976_v48  ;;  %836 = vst.msk [vmem:[%s1511_s7 + $0x78] sm:$0xff] %vm310_vm0, %v804_v11  ;;  %v939_v26 = vmul.f32 %v804_v11, %v804_v11  ;;  %v983_v35 = vsel %vm310_vm0, %v938_v15, 0.0  ;;  %847 = vst.msk [vmem:[%s1511_s7 + $0xd0] sm:$0xff] %vm310_vm0, %v1654_v33 }
 0x10c   : > { %v979_v17 = vsel %vm310_vm0, %v936_v54, 0.0  ;;  %834 = vst.msk [vmem:[%s1511_s7 + $0x68] sm:$0xff] %vm310_vm0, %v802_v13  ;;  %v878_v1 = vsel %vm310_vm0, %v802_v13, 0.0  ;;  %v937_v18 = vmul.f32 %v802_v13, %v802_v13  ;;  %v882_v36 = vsel %vm310_vm0, %v804_v11, 0.0  ;;  %v813_v38 = vld [vmem:[#allocation2 + $0xc0] sm:$0xff]  ;;  %v1667_v41 = vld [vmem:[#allocation2 + $0xd8] sm:$0xff] }
 0x10d   : > { %v980_v23 = vadd.f32 %v979_v17, %v978_v16  ;;  %v879_v24 = vadd.f32 %v878_v1, %v877_v10  ;;  %845 = vst.msk [vmem:[%s1511_s7 + $0xc0] sm:$0xff] %vm310_vm0, %v813_v38  ;;  %v985_v42 = vsel %vm310_vm0, %v939_v26, 0.0  ;;  %848 = vst.msk [vmem:[%s1511_s7 + $0xd8] sm:$0xff] %vm310_vm0, %v1667_v41  ;;  %v814_v44 = vld [vmem:[#allocation2 + $0xc8] sm:$0xff]  ;;  %v989_v61 = vsel %vm310_vm0, %v941_v19, 0.0 }
 0x10e   : > { %v981_v27 = vsel %vm310_vm0, %v937_v18, 0.0  ;;  %846 = vst.msk [vmem:[%s1511_s7 + $0xc8] sm:$0xff] %vm310_vm0, %v814_v44  ;;  %v1678_v47 = vld [vmem:[#allocation2 + $0xf0] sm:$0xff]  ;;  %v944_v34 = vmul.f32 %v1590_v0, %v1590_v0  ;;  %v991_v2 = vsel %vm310_vm0, %v942_v50, 0.0  ;;  %v890_v12 = vsel %vm310_vm0, %v1547_v28, 0.0 }
 0x10f   : > { %v881_v30 = vadd.f32 %v880_v25, %v879_v24  ;;  %v982_v31 = vadd.f32 %v981_v27, %v980_v23  ;;  %v817_v49 = vld [vmem:[#allocation2 + $0xe0] sm:$0xff]  ;;  %851 = vst.msk [vmem:[%s1511_s7 + $0xf0] sm:$0xff] %vm310_vm0, %v1678_v47  ;;  %v1689_v55 = vld [vmem:[#allocation2 + $0xf8] sm:$0xff]  ;;  %v892_v3 = vsel %vm310_vm0, %v1590_v0, 0.0  ;;  %v993_v4 = vsel %vm310_vm0, %v943_v58, 0.0 }
 0x110   : > { %849 = vst.msk [vmem:[%s1511_s7 + $0xe0] sm:$0xff] %vm310_vm0, %v817_v49  ;;  %v818_v56 = vld [vmem:[#allocation2 + $0xe8] sm:$0xff]  ;;  %852 = vst.msk [vmem:[%s1511_s7 + $0xf8] sm:$0xff] %vm310_vm0, %v1689_v55  ;;  %v995_v54 = vsel %vm310_vm0, %v944_v34, 0.0  ;;  %v945_v5 = vmul.f32 %v810_v32, %v810_v32  ;;  %v946_v9 = vmul.f32 %v1581_v59, %v1581_v59  ;;  %v894_v10 = vsel %vm310_vm0, %v810_v32, 0.0 }
 0x111   : > { %v984_v39 = vadd.f32 %v983_v35, %v982_v31  ;;  %v883_v40 = vadd.f32 %v882_v36, %v881_v30  ;;  %850 = vst.msk [vmem:[%s1511_s7 + $0xe8] sm:$0xff] %vm310_vm0, %v818_v56  ;;  %v896_v28 = vsel %vm310_vm0, %v1581_v59, 0.0  ;;  %v947_v0 = vmul.f32 %v1597_v8, %v1597_v8 }
 0x112   : > { %v997_v60 = vsel %vm310_vm0, %v945_v5, 0.0  ;;  %v948_v14 = vmul.f32 %v813_v38, %v813_v38  ;;  %v999_v17 = vsel %vm310_vm0, %v946_v9, 0.0  ;;  %v898_v1 = vsel %vm310_vm0, %v1597_v8, 0.0 }
 0x113   : > { %v885_v45 = vadd.f32 %v884_v37, %v883_v40  ;;  %v986_v46 = vadd.f32 %v985_v42, %v984_v39  ;;  %v900_v18 = vsel %vm310_vm0, %v813_v38, 0.0  ;;  %v1001_v23 = vsel %vm310_vm0, %v947_v0, 0.0 }
 0x114   : > { %v1003_v59 = vsel %vm310_vm0, %v948_v14, 0.0  ;;  %v949_v24 = vmul.f32 %v814_v44, %v814_v44  ;;  %v950_v27 = vmul.f32 %v1654_v33, %v1654_v33  ;;  %v902_v29 = vsel %vm310_vm0, %v814_v44, 0.0 }
 0x115   : > { %v988_v52 = vadd.f32 %v987_v43, %v986_v46  ;;  %v887_v53 = vadd.f32 %v886_v51, %v885_v45  ;;  %v904_v8 = vsel %vm310_vm0, %v1654_v33, 0.0  ;;  %v951_v32 = vmul.f32 %v1667_v41, %v1667_v41 }
 0x116   : > { %v1005_v35 = vsel %vm310_vm0, %v949_v24, 0.0  ;;  %v952_v36 = vmul.f32 %v817_v49, %v817_v49  ;;  %v1007_v39 = vsel %vm310_vm0, %v950_v27, 0.0  ;;  %v906_v40 = vsel %vm310_vm0, %v1667_v41, 0.0 }
 0x117   : > { %v889_v62 = vadd.f32 %v888_v57, %v887_v53  ;;  %v990_v63 = vadd.f32 %v989_v61, %v988_v52  ;;  %v908_v42 = vsel %vm310_vm0, %v817_v49, 0.0  ;;  %v1009_v44 = vsel %vm310_vm0, %v951_v32, 0.0 }
 0x118   : > { %v1011_v33 = vsel %vm310_vm0, %v952_v36, 0.0  ;;  %v953_v45 = vmul.f32 %v818_v56, %v818_v56  ;;  %v954_v51 = vmul.f32 %v1678_v47, %v1678_v47  ;;  %v910_v52 = vsel %vm310_vm0, %v818_v56, 0.0 }
 0x119   : > { %v992_v21 = vadd.f32 %v991_v2, %v990_v63  ;;  %v891_v48 = vadd.f32 %v890_v12, %v889_v62  ;;  %v912_v41 = vsel %vm310_vm0, %v1678_v47, 0.0  ;;  %v955_v49 = vmul.f32 %v1689_v55, %v1689_v55 }
 0x11a   : > { %v1013_v58 = vsel %vm310_vm0, %v953_v45, 0.0  ;;  %v1015_v62 = vsel %vm310_vm0, %v954_v51, 0.0  ;;  %v914_v63 = vsel %vm310_vm0, %v1689_v55, 0.0 }
 0x11b   : > { %v893_v6 = vadd.f32 %v892_v3, %v891_v48  ;;  %v994_v7 = vadd.f32 %v993_v4, %v992_v21  ;;  %v1017_v12 = vsel %vm310_vm0, %v955_v49, 0.0 }
 0x11d   : > { %v996_v11 = vadd.f32 %v995_v54, %v994_v7  ;;  %v895_v13 = vadd.f32 %v894_v10, %v893_v6 }
 0x11f   : > { %v897_v15 = vadd.f32 %v896_v28, %v895_v13  ;;  %v998_v16 = vadd.f32 %v997_v60, %v996_v11 }
 0x121   : > { %v1000_v20 = vadd.f32 %v999_v17, %v998_v16  ;;  %v899_v22 = vadd.f32 %v898_v1, %v897_v15 }
 0x123   : > { %v901_v25 = vadd.f32 %v900_v18, %v899_v22  ;;  %v1002_v26 = vadd.f32 %v1001_v23, %v1000_v20 }
 0x125   : > { %v1004_v30 = vadd.f32 %v1003_v59, %v1002_v26  ;;  %v903_v31 = vadd.f32 %v902_v29, %v901_v25 }
 0x127   : > { %v905_v37 = vadd.f32 %v904_v8, %v903_v31  ;;  %v1006_v38 = vadd.f32 %v1005_v35, %v1004_v30 }
 0x129   : > { %v1008_v43 = vadd.f32 %v1007_v39, %v1006_v38  ;;  %v907_v19 = vadd.f32 %v906_v40, %v905_v37 }
 0x12b   : > { %v909_v46 = vadd.f32 %v908_v42, %v907_v19  ;;  %v1010_v50 = vadd.f32 %v1009_v44, %v1008_v43 }
 0x12d   : > { %v1012_v53 = vadd.f32 %v1011_v33, %v1010_v50  ;;  %v911_v57 = vadd.f32 %v910_v52, %v909_v46 }
 0x12f   : > { %v913_v61 = vadd.f32 %v912_v41, %v911_v57  ;;  %v1014_v34 = vadd.f32 %v1013_v58, %v1012_v53 }
 0x131   : > { %v915_v2 = vadd.f32 %v914_v63, %v913_v61  ;;  %v1016_v56 = vadd.f32 %v1015_v62, %v1014_v34 }
 0x133   : > { %v916_v3 = vrot.slane %v915_v2, 4  ;;  %v1018_v21 = vadd.f32 %v1017_v12, %v1016_v56 }
 0x135   : > { %v917_v47 = vadd.f32 %v916_v3, %v915_v2  ;;  %v1019_v48 = vrot.slane %v1018_v21, 4 }
 0x137   : > { %v918_v4 = vrot.slane %v917_v47, 2  ;;  %v1020_v54 = vadd.f32 %v1019_v48, %v1018_v21 }
 0x139   : > { %v919_v5 = vadd.f32 %v918_v4, %v917_v47  ;;  %v1021_v6 = vrot.slane %v1020_v54, 2 }
 0x13b   : > { %v920_v7 = vrot.slane %v919_v5, 1  ;;  %v1022_v9 = vadd.f32 %v1021_v6, %v1020_v54 }
 0x13d   : > { %v921_v55 = vadd.f32 %v920_v7, %v919_v5  ;;  %v1023_v10 = vrot.slane %v1022_v9, 1 }
 0x13f   : > { %923 = vst.msk [vmem:[%s298_s10] sm:$0x1] %vm922_vm3, %v921_v55  ;;  %v1024_v11 = vadd.f32 %v1023_v10, %v1022_v9 }
 0x141   : > { %1025 = vst.msk [vmem:[%s304_s13] sm:$0x1] %vm922_vm3, %v1024_v11 }
 0x142 PF: > { %s15_s17 = sadd.s32 1, %s1373_s17   ;;  %s1772_s15 = smov %s1369_s16 }
 0x143   : > { %p12_p6 = scmp.ge.s32.totalorder %s15_s17, 4   ;;  %s1773_s16 = smov %s1775_s18 }
 0x145   :  { %14 = sbr.rel (!%p12_p6) target bundleno = 2 (0x2), region = 93 }

</bundles_post_ra>
